<compile_context>
chip_gen: v6e
topology: v6e:2x2x1
jax: 0.10.0
libtpu: 0.0.40
codegen_flags: <defaults>
</compile_context>

<pallas_src>
import functools

import jax
import jax.numpy as jnp
from jax.experimental import pallas as pl
from jax.experimental.pallas import tpu as pltpu

LANE = 128
SUBLANE = 8
TILE = 512                            # node-dim tile for the large-graph path
FUSED_MAX_NODES = 1024                # padded-N threshold for single fused kernel
XW_RESIDENT_BYTES = 4 * 1024 * 1024   # per-copy budget to keep XW VMEM-resident
VMEM_LIMIT = 32 * 1024 * 1024


def _round_up(x, m):
    return (x + m - 1) // m * m


def _pad2(a, rows, cols, dtype):
    return jnp.pad(a, ((0, rows - a.shape[0]), (0, cols - a.shape[1]))).astype(dtype)


# --------------------------- Pallas kernels ---------------------------------

def gcn_fused_kernel(a_ref, x_ref, p_ref, w1_ref, b1_ref, w2_ref, b2_ref,
                     wl_ref, bl_ref, y_ref):
    """Whole GCN forward in one grid point (everything VMEM-resident)."""
    a = a_ref[...]
    xw1 = jnp.dot(x_ref[...], w1_ref[...],
                  preferred_element_type=jnp.float32).astype(jnp.bfloat16)
    h1 = jnp.maximum(jnp.dot(a, xw1, preferred_element_type=jnp.float32)
                     + b1_ref[...], 0.0).astype(jnp.bfloat16)
    xw2 = jnp.dot(h1, w2_ref[...],
                  preferred_element_type=jnp.float32).astype(jnp.bfloat16)
    h2 = jnp.maximum(jnp.dot(a, xw2, preferred_element_type=jnp.float32)
                     + b2_ref[...], 0.0).astype(jnp.bfloat16)
    pooled = jnp.dot(p_ref[...], h2,
                     preferred_element_type=jnp.float32).astype(jnp.bfloat16)
    y_ref[...] = (jnp.dot(pooled, wl_ref[...], preferred_element_type=jnp.float32)
                  + bl_ref[...])


def xw_kernel(x_ref, w_ref, o_ref):
    """Feature transform XW = X @ W, row-tiled, W resident."""
    o_ref[...] = jnp.dot(x_ref[...], w_ref[...],
                         preferred_element_type=jnp.float32).astype(o_ref.dtype)


def layer1_kernel(a_ref, xw_ref, b_ref, w2_ref, o_ref, acc_ref, *, tk, xw_resident):
    """Layer 1: acc = sum_k A[i,k] @ XW1[k]; epilogue emits relu(acc+b1) @ W2."""
    k = pl.program_id(1)

    @pl.when(k == 0)
    def _():
        acc_ref[...] = jnp.zeros_like(acc_ref)

    if xw_resident:
        start = pl.multiple_of(k * tk, tk)
        xw = xw_ref[pl.ds(start, tk), :]
    else:
        xw = xw_ref[...]
    acc_ref[...] += jnp.dot(a_ref[...], xw, preferred_element_type=jnp.float32)

    @pl.when(k == pl.num_programs(1) - 1)
    def _():
        h1 = jnp.maximum(acc_ref[...] + b_ref[...], 0.0).astype(jnp.bfloat16)
        o_ref[...] = jnp.dot(h1, w2_ref[...],
                             preferred_element_type=jnp.float32).astype(o_ref.dtype)


def layer2_pool_kernel(a_ref, xw_ref, b_ref, p_ref, wl_ref, bl_ref, y_ref,
                       acc_ref, pool_ref, *, tk, xw_resident):
    """Layer 2 + global_mean_pool + Linear, fused.

    acc_ref  : per-row-tile f32 accumulator (reset at k==0)
    pool_ref : (Gp, Hp) f32 pooled accumulator (reset once, lives across i)
    """
    i = pl.program_id(0)
    k = pl.program_id(1)
    last_k = pl.num_programs(1) - 1
    last_i = pl.num_programs(0) - 1

    @pl.when(jnp.logical_and(i == 0, k == 0))
    def _():
        pool_ref[...] = jnp.zeros_like(pool_ref)

    @pl.when(k == 0)
    def _():
        acc_ref[...] = jnp.zeros_like(acc_ref)

    if xw_resident:
        start = pl.multiple_of(k * tk, tk)
        xw = xw_ref[pl.ds(start, tk), :]
    else:
        xw = xw_ref[...]
    acc_ref[...] += jnp.dot(a_ref[...], xw, preferred_element_type=jnp.float32)

    @pl.when(k == last_k)
    def _():
        h2 = jnp.maximum(acc_ref[...] + b_ref[...], 0.0).astype(jnp.bfloat16)
        pool_ref[...] += jnp.dot(p_ref[...], h2, preferred_element_type=jnp.float32)

    @pl.when(jnp.logical_and(i == last_i, k == last_k))
    def _():
        pooled = pool_ref[...].astype(jnp.bfloat16)
        y_ref[...] = (jnp.dot(pooled, wl_ref[...],
                              preferred_element_type=jnp.float32) + bl_ref[...])


# --------------------------- pallas_call wrappers ----------------------------

def _gcn_fused(a_p, x_p, p_p, w1_p, b1_p, w2_p, b2_p, wl_p, bl_p):
    gp = p_p.shape[0]
    op = wl_p.shape[1]

    def full(arr):
        return pl.BlockSpec(arr.shape, lambda i: (0, 0))

    return pl.pallas_call(
        gcn_fused_kernel,
        out_shape=jax.ShapeDtypeStruct((gp, op), jnp.float32),
        grid_spec=pltpu.PrefetchScalarGridSpec(
            num_scalar_prefetch=0,
            grid=(1,),
            in_specs=[full(a_p), full(x_p), full(p_p), full(w1_p), full(b1_p),
                      full(w2_p), full(b2_p), full(wl_p), full(bl_p)],
            out_specs=pl.BlockSpec((gp, op), lambda i: (0, 0)),
        ),
        compiler_params=pltpu.CompilerParams(
            dimension_semantics=("arbitrary",),
            vmem_limit_bytes=VMEM_LIMIT,
        ),
    )(a_p, x_p, p_p, w1_p, b1_p, w2_p, b2_p, wl_p, bl_p)


def _xw(x_p, w_p, *, tm):
    np_, fp = x_p.shape
    hp = w_p.shape[1]
    return pl.pallas_call(
        xw_kernel,
        out_shape=jax.ShapeDtypeStruct((np_, hp), jnp.bfloat16),
        grid_spec=pltpu.PrefetchScalarGridSpec(
            num_scalar_prefetch=0,
            grid=(np_ // tm,),
            in_specs=[pl.BlockSpec((tm, fp), lambda i: (i, 0)),
                      pl.BlockSpec((fp, hp), lambda i: (0, 0))],
            out_specs=pl.BlockSpec((tm, hp), lambda i: (i, 0)),
        ),
        compiler_params=pltpu.CompilerParams(
            dimension_semantics=("parallel",),
            vmem_limit_bytes=VMEM_LIMIT,
        ),
    )(x_p, w_p)


def _layer1(a_p, xw1_p, b1_p, w2_p, *, tm, tk, xw_resident):
    np_ = a_p.shape[0]
    hp = xw1_p.shape[1]
    xw_spec = (pl.BlockSpec((np_, hp), lambda i, k: (0, 0)) if xw_resident
               else pl.BlockSpec((tk, hp), lambda i, k: (k, 0)))
    return pl.pallas_call(
        functools.partial(layer1_kernel, tk=tk, xw_resident=xw_resident),
        out_shape=jax.ShapeDtypeStruct((np_, hp), jnp.bfloat16),
        grid_spec=pltpu.PrefetchScalarGridSpec(
            num_scalar_prefetch=0,
            grid=(np_ // tm, np_ // tk),
            in_specs=[
                pl.BlockSpec((tm, tk), lambda i, k: (i, k)),   # A_hat tile (streamed)
                xw_spec,                                       # XW1 (resident)
                pl.BlockSpec((1, hp), lambda i, k: (0, 0)),    # b1 resident
                pl.BlockSpec((hp, hp), lambda i, k: (0, 0)),   # W2 resident
            ],
            out_specs=pl.BlockSpec((tm, hp), lambda i, k: (i, 0)),
            scratch_shapes=[pltpu.VMEM((tm, hp), jnp.float32)],
        ),
        compiler_params=pltpu.CompilerParams(
            dimension_semantics=("parallel", "arbitrary"),
            vmem_limit_bytes=VMEM_LIMIT,
        ),
    )(a_p, xw1_p, b1_p, w2_p)


def _layer2_pool(a_p, xw2_p, b2_p, p_p, wl_p, bl_p, *, tm, tk, xw_resident):
    np_ = a_p.shape[0]
    hp = xw2_p.shape[1]
    gp = p_p.shape[0]
    op = wl_p.shape[1]
    xw_spec = (pl.BlockSpec((np_, hp), lambda i, k: (0, 0)) if xw_resident
               else pl.BlockSpec((tk, hp), lambda i, k: (k, 0)))
    return pl.pallas_call(
        functools.partial(layer2_pool_kernel, tk=tk, xw_resident=xw_resident),
        out_shape=jax.ShapeDtypeStruct((gp, op), jnp.float32),
        grid_spec=pltpu.PrefetchScalarGridSpec(
            num_scalar_prefetch=0,
            grid=(np_ // tm, np_ // tk),
            in_specs=[
                pl.BlockSpec((tm, tk), lambda i, k: (i, k)),   # A_hat tile (streamed)
                xw_spec,                                       # XW2 (resident)
                pl.BlockSpec((1, hp), lambda i, k: (0, 0)),    # b2 resident
                pl.BlockSpec((gp, tm), lambda i, k: (0, i)),   # pooling columns of tile i
                pl.BlockSpec((hp, op), lambda i, k: (0, 0)),   # W_lin resident
                pl.BlockSpec((1, op), lambda i, k: (0, 0)),    # b_lin resident
            ],
            out_specs=pl.BlockSpec((gp, op), lambda i, k: (0, 0)),
            scratch_shapes=[pltpu.VMEM((tm, hp), jnp.float32),
                            pltpu.VMEM((gp, hp), jnp.float32)],
        ),
        compiler_params=pltpu.CompilerParams(
            # Both axes "arbitrary": the pooled VMEM accumulator is shared
            # across row tiles, so it must not be sharded across TensorCores.
            dimension_semantics=("arbitrary", "arbitrary"),
            vmem_limit_bytes=VMEM_LIMIT,
        ),
    )(a_p, xw2_p, b2_p, p_p, wl_p, bl_p)


@jax.jit
def gcn_forward(x, a_hat, pool_mat, w1, b1, w2, b2, w_lin, b_lin):
    n, f = x.shape
    h = w1.shape[1]
    o = w_lin.shape[1]
    g = pool_mat.shape[0]

    fp = _round_up(f, LANE)
    hp = _round_up(h, LANE)
    op = _round_up(o, LANE)
    gp = _round_up(g, SUBLANE)

    np_small = _round_up(n, LANE)
    if np_small <= FUSED_MAX_NODES:
        # ---- small-graph path: one fused kernel, everything VMEM-resident ----
        np_ = np_small
        a_p = _pad2(a_hat, np_, np_, jnp.bfloat16)
        x_p = _pad2(x, np_, fp, jnp.bfloat16)
        p_p = _pad2(pool_mat, gp, np_, jnp.bfloat16)
        w1_p = _pad2(w1, fp, hp, jnp.bfloat16)
        w2_p = _pad2(w2, hp, hp, jnp.bfloat16)
        wl_p = _pad2(w_lin, hp, op, jnp.bfloat16)
        b1_p = _pad2(b1, 1, hp, jnp.float32)
        b2_p = _pad2(b2, 1, hp, jnp.float32)
        bl_p = _pad2(b_lin, 1, op, jnp.float32)
        out_p = _gcn_fused(a_p, x_p, p_p, w1_p, b1_p, w2_p, b2_p, wl_p, bl_p)
    else:
        # ---- large-graph path: tiled, A streamed once per layer ----
        tm = tk = TILE
        np_ = _round_up(n, tm)                 # guarantees >= 2 row tiles here
        a_p = _pad2(a_hat, np_, np_, jnp.bfloat16)
        x_p = _pad2(x, np_, fp, jnp.bfloat16)
        p_p = _pad2(pool_mat, gp, np_, jnp.bfloat16)
        w1_p = _pad2(w1, fp, hp, jnp.bfloat16)
        w2_p = _pad2(w2, hp, hp, jnp.bfloat16)
        wl_p = _pad2(w_lin, hp, op, jnp.bfloat16)
        b1_p = _pad2(b1, 1, hp, jnp.float32)
        b2_p = _pad2(b2, 1, hp, jnp.float32)
        bl_p = _pad2(b_lin, 1, op, jnp.float32)

        xw_resident = (np_ * hp * 2) <= XW_RESIDENT_BYTES

        xw1 = _xw(x_p, w1_p, tm=tm)                                   # X @ W1
        xw2 = _layer1(a_p, xw1, b1_p, w2_p,                           # relu(A@XW1+b1)@W2
                      tm=tm, tk=tk, xw_resident=xw_resident)
        out_p = _layer2_pool(a_p, xw2, b2_p, p_p, wl_p, bl_p,         # pool+linear fused
                             tm=tm, tk=tk, xw_resident=xw_resident)
    return out_p[:g, :o]


# ---------------- plain-JAX glue (graph preprocessing, params, reference) ----

def build_normalized_adj(edge_index, num_nodes):
    """Dense GCN-normalized adjacency: D^{-1/2} (A + I) D^{-1/2}.

    Assumes the edge list is deduplicated and self-loop-free (PyG convention).
    """
    src, dst = edge_index[0], edge_index[1]
    a = jnp.zeros((num_nodes, num_nodes), jnp.float32)
    a = a.at[dst, src].add(1.0)                      # message flows source -> target
    a = a + jnp.eye(num_nodes, dtype=jnp.float32)    # add self-loops
    deg = a.sum(axis=1)
    d_inv_sqrt = jnp.where(deg > 0.0, 1.0 / jnp.sqrt(deg), 0.0)
    return d_inv_sqrt[:, None] * a * d_inv_sqrt[None, :]


def build_pool_matrix(batch, num_graphs):
    """Row-normalized one-hot assignment matrix (num_graphs, N) => mean pool."""
    onehot = (batch[None, :] == jnp.arange(num_graphs)[:, None]).astype(jnp.float32)
    counts = onehot.sum(axis=1, keepdims=True)
    return onehot / jnp.maximum(counts, 1.0)


def init_params(key, num_node_features, hidden_dim, out_dim):
    k1, k2, k3 = jax.random.split(key, 3)
    w1 = jax.random.normal(k1, (num_node_features, hidden_dim), jnp.float32) * 0.1
    b1 = jnp.zeros((1, hidden_dim), jnp.float32)
    w2 = jax.random.normal(k2, (hidden_dim, hidden_dim), jnp.float32) * 0.1
    b2 = jnp.zeros((1, hidden_dim), jnp.float32)
    w_lin = jax.random.normal(k3, (hidden_dim, out_dim), jnp.float32) * 0.1
    b_lin = jnp.zeros((1, out_dim), jnp.float32)
    return w1, b1, w2, b2, w_lin, b_lin


def gcn_reference(x, a_hat, pool_mat, w1, b1, w2, b2, w_lin, b_lin):
    h = jnp.maximum(a_hat @ (x @ w1) + b1, 0.0)
    h = jnp.maximum(a_hat @ (h @ w2) + b2, 0.0)
    return (pool_mat @ h) @ w_lin + b_lin


if __name__ == "__main__":
    NUM_NODES = 16
    NUM_NODE_FEATURES = 8
    HIDDEN_DIM = 32
    OUT_DIM = 1
    NUM_GRAPHS = 2

    key = jax.random.PRNGKey(0)
    k_x, k_params = jax.random.split(key)

    # Node features
    x = jax.random.normal(k_x, (NUM_NODES, NUM_NODE_FEATURES), jnp.float32)

    # Two ring graphs of 8 nodes each (bidirectional edges)
    edges = []
    for graph in range(NUM_GRAPHS):
        base = graph * 8
        for i in range(8):
            a_node = base + i
            b_node = base + (i + 1) % 8
            edges.append((a_node, b_node))
            edges.append((b_node, a_node))
    edge_index = jnp.array(edges, dtype=jnp.int32).T          # (2, E)

    # batch assignment: first 8 nodes -> graph 0, next 8 -> graph 1
    batch = jnp.array([0] * 8 + [1] * 8, dtype=jnp.int32)

    # Deterministic parameter init (synthetic weights, no checkpoint load)
    w1, b1, w2, b2, w_lin, b_lin = init_params(
        k_params, NUM_NODE_FEATURES, HIDDEN_DIM, OUT_DIM)

    a_hat = build_normalized_adj(edge_index, NUM_NODES)
    pool_mat = build_pool_matrix(batch, NUM_GRAPHS)

    out = gcn_forward(x, a_hat, pool_mat, w1, b1, w2, b2, w_lin, b_lin)
    out = jax.block_until_ready(out)

    ref = gcn_reference(x, a_hat, pool_mat, w1, b1, w2, b2, w_lin, b_lin)
    assert out.shape == (NUM_GRAPHS, OUT_DIM)
    # Loose tolerance: matmul inputs run in bf16 (f32 accumulation).
    assert jnp.allclose(out, ref, rtol=5e-2, atol=2e-2), (out, ref)
    print("KERNEL_OK")
</pallas_src>

<mosaic_0001>
module attributes {stable_mosaic.version = 11 : i64} {
  func.func @gcn_fused_kernel(%arg0: i32, %arg1: memref<128x128xbf16, #tpu.memory_space<vmem>>, %arg2: memref<128x128xbf16, #tpu.memory_space<vmem>>, %arg3: memref<8x128xbf16, #tpu.memory_space<vmem>>, %arg4: memref<128x128xbf16, #tpu.memory_space<vmem>>, %arg5: memref<1x128xf32, #tpu.memory_space<vmem>>, %arg6: memref<128x128xbf16, #tpu.memory_space<vmem>>, %arg7: memref<1x128xf32, #tpu.memory_space<vmem>>, %arg8: memref<128x128xbf16, #tpu.memory_space<vmem>>, %arg9: memref<1x128xf32, #tpu.memory_space<vmem>>, %arg10: memref<8x128xf32, #tpu.memory_space<vmem>>) attributes {dimension_semantics = [#tpu.dimension_semantics<arbitrary>], iteration_bounds = array<i64: 1>, scalar_prefetch = 0 : i64, scratch_operands = 0 : i64, tpu.core_type = #tpu.core_type<tc>, window_params = [{pipeline_mode = #tpu.pipeline_mode<synchronous>, transform_indices = @transform_0, window_bounds = array<i64: 128, 128>}, {pipeline_mode = #tpu.pipeline_mode<synchronous>, transform_indices = @transform_1, window_bounds = array<i64: 128, 128>}, {pipeline_mode = #tpu.pipeline_mode<synchronous>, transform_indices = @transform_2, window_bounds = array<i64: 8, 128>}, {pipeline_mode = #tpu.pipeline_mode<synchronous>, transform_indices = @transform_3, window_bounds = array<i64: 128, 128>}, {pipeline_mode = #tpu.pipeline_mode<synchronous>, transform_indices = @transform_4, window_bounds = array<i64: 1, 128>}, {pipeline_mode = #tpu.pipeline_mode<synchronous>, transform_indices = @transform_5, window_bounds = array<i64: 128, 128>}, {pipeline_mode = #tpu.pipeline_mode<synchronous>, transform_indices = @transform_6, window_bounds = array<i64: 1, 128>}, {pipeline_mode = #tpu.pipeline_mode<synchronous>, transform_indices = @transform_7, window_bounds = array<i64: 128, 128>}, {pipeline_mode = #tpu.pipeline_mode<synchronous>, transform_indices = @transform_8, window_bounds = array<i64: 1, 128>}, {pipeline_mode = #tpu.pipeline_mode<synchronous>, transform_indices = @transform_9, window_bounds = array<i64: 8, 128>}]} {
    %c0 = arith.constant 0 : index
    %c0_0 = arith.constant 0 : index
    %0 = vector.load %arg1[%c0, %c0_0] : memref<128x128xbf16, #tpu.memory_space<vmem>>, vector<128x128xbf16>
    %c0_1 = arith.constant 0 : index
    %c0_2 = arith.constant 0 : index
    %1 = vector.load %arg2[%c0_1, %c0_2] : memref<128x128xbf16, #tpu.memory_space<vmem>>, vector<128x128xbf16>
    %c0_3 = arith.constant 0 : index
    %c0_4 = arith.constant 0 : index
    %2 = vector.load %arg4[%c0_3, %c0_4] : memref<128x128xbf16, #tpu.memory_space<vmem>>, vector<128x128xbf16>
    %cst = arith.constant dense<0.000000e+00> : vector<128x128xf32>
    %3 = tpu.matmul %1, %2, %cst {dimension_numbers = #tpu.dot_dimension_numbers<[1], [0], [0], [1], [0, 0, 1, 1], [], []>} : vector<128x128xbf16>, vector<128x128xbf16>, vector<128x128xf32> -> vector<128x128xf32>
    %4 = arith.truncf %3 : vector<128x128xf32> to vector<128x128xbf16>
    %cst_5 = arith.constant dense<0.000000e+00> : vector<128x128xf32>
    %5 = tpu.matmul %0, %4, %cst_5 {dimension_numbers = #tpu.dot_dimension_numbers<[1], [0], [0], [1], [0, 0, 1, 1], [], []>} : vector<128x128xbf16>, vector<128x128xbf16>, vector<128x128xf32> -> vector<128x128xf32>
    %c0_6 = arith.constant 0 : index
    %c0_7 = arith.constant 0 : index
    %6 = vector.load %arg5[%c0_6, %c0_7] : memref<1x128xf32, #tpu.memory_space<vmem>>, vector<1x128xf32>
    %7 = vector.broadcast %6 : vector<1x128xf32> to vector<128x128xf32>
    %8 = arith.addf %5, %7 : vector<128x128xf32>
    %cst_8 = arith.constant 0.000000e+00 : f32
    %9 = vector.broadcast %cst_8 : f32 to vector<128x128xf32>
    %10 = arith.maximumf %8, %9 : vector<128x128xf32>
    %11 = arith.truncf %10 : vector<128x128xf32> to vector<128x128xbf16>
    %c0_9 = arith.constant 0 : index
    %c0_10 = arith.constant 0 : index
    %12 = vector.load %arg6[%c0_9, %c0_10] : memref<128x128xbf16, #tpu.memory_space<vmem>>, vector<128x128xbf16>
    %cst_11 = arith.constant dense<0.000000e+00> : vector<128x128xf32>
    %13 = tpu.matmul %11, %12, %cst_11 {dimension_numbers = #tpu.dot_dimension_numbers<[1], [0], [0], [1], [0, 0, 1, 1], [], []>} : vector<128x128xbf16>, vector<128x128xbf16>, vector<128x128xf32> -> vector<128x128xf32>
    %14 = arith.truncf %13 : vector<128x128xf32> to vector<128x128xbf16>
    %cst_12 = arith.constant dense<0.000000e+00> : vector<128x128xf32>
    %15 = tpu.matmul %0, %14, %cst_12 {dimension_numbers = #tpu.dot_dimension_numbers<[1], [0], [0], [1], [0, 0, 1, 1], [], []>} : vector<128x128xbf16>, vector<128x128xbf16>, vector<128x128xf32> -> vector<128x128xf32>
    %c0_13 = arith.constant 0 : index
    %c0_14 = arith.constant 0 : index
    %16 = vector.load %arg7[%c0_13, %c0_14] : memref<1x128xf32, #tpu.memory_space<vmem>>, vector<1x128xf32>
    %17 = vector.broadcast %16 : vector<1x128xf32> to vector<128x128xf32>
    %18 = arith.addf %15, %17 : vector<128x128xf32>
    %cst_15 = arith.constant 0.000000e+00 : f32
    %19 = vector.broadcast %cst_15 : f32 to vector<128x128xf32>
    %20 = arith.maximumf %18, %19 : vector<128x128xf32>
    %21 = arith.truncf %20 : vector<128x128xf32> to vector<128x128xbf16>
    %c0_16 = arith.constant 0 : index
    %c0_17 = arith.constant 0 : index
    %22 = vector.load %arg3[%c0_16, %c0_17] : memref<8x128xbf16, #tpu.memory_space<vmem>>, vector<8x128xbf16>
    %cst_18 = arith.constant dense<0.000000e+00> : vector<8x128xf32>
    %23 = tpu.matmul %22, %21, %cst_18 {dimension_numbers = #tpu.dot_dimension_numbers<[1], [0], [0], [1], [0, 0, 1, 1], [], []>} : vector<8x128xbf16>, vector<128x128xbf16>, vector<8x128xf32> -> vector<8x128xf32>
    %24 = arith.truncf %23 : vector<8x128xf32> to vector<8x128xbf16>
    %c0_19 = arith.constant 0 : index
    %c0_20 = arith.constant 0 : index
    %25 = vector.load %arg8[%c0_19, %c0_20] : memref<128x128xbf16, #tpu.memory_space<vmem>>, vector<128x128xbf16>
    %cst_21 = arith.constant dense<0.000000e+00> : vector<8x128xf32>
    %26 = tpu.matmul %24, %25, %cst_21 {dimension_numbers = #tpu.dot_dimension_numbers<[1], [0], [0], [1], [0, 0, 1, 1], [], []>} : vector<8x128xbf16>, vector<128x128xbf16>, vector<8x128xf32> -> vector<8x128xf32>
    %c0_22 = arith.constant 0 : index
    %c0_23 = arith.constant 0 : index
    %27 = vector.load %arg9[%c0_22, %c0_23] : memref<1x128xf32, #tpu.memory_space<vmem>>, vector<1x128xf32>
    %28 = vector.broadcast %27 : vector<1x128xf32> to vector<8x128xf32>
    %29 = arith.addf %26, %28 : vector<8x128xf32>
    %c0_24 = arith.constant 0 : index
    %c0_25 = arith.constant 0 : index
    %30 = vector.load %arg10[%c0_24, %c0_25] : memref<8x128xf32, #tpu.memory_space<vmem>>, vector<8x128xf32>
    tpu.vector_store %arg10[%c0_24, %c0_25], %29 {strides = array<i32>} : memref<8x128xf32, #tpu.memory_space<vmem>>, vector<8x128xf32>,
    return
  }
  func.func @transform_0(%arg0: i32) -> (i32, i32) {
    %c0_i32 = arith.constant 0 : i32
    %c0_i32_0 = arith.constant 0 : i32
    %c0_i32_1 = arith.constant 0 : i32
    return %c0_i32, %c0_i32_0 : i32, i32
  }
  func.func @transform_1(%arg0: i32) -> (i32, i32) {
    %c0_i32 = arith.constant 0 : i32
    %c0_i32_0 = arith.constant 0 : i32
    %c0_i32_1 = arith.constant 0 : i32
    return %c0_i32, %c0_i32_0 : i32, i32
  }
  func.func @transform_2(%arg0: i32) -> (i32, i32) {
    %c0_i32 = arith.constant 0 : i32
    %c0_i32_0 = arith.constant 0 : i32
    %c0_i32_1 = arith.constant 0 : i32
    return %c0_i32, %c0_i32_0 : i32, i32
  }
  func.func @transform_3(%arg0: i32) -> (i32, i32) {
    %c0_i32 = arith.constant 0 : i32
    %c0_i32_0 = arith.constant 0 : i32
    %c0_i32_1 = arith.constant 0 : i32
    return %c0_i32, %c0_i32_0 : i32, i32
  }
  func.func @transform_4(%arg0: i32) -> (i32, i32) {
    %c0_i32 = arith.constant 0 : i32
    %c0_i32_0 = arith.constant 0 : i32
    %c0_i32_1 = arith.constant 0 : i32
    return %c0_i32, %c0_i32_0 : i32, i32
  }
  func.func @transform_5(%arg0: i32) -> (i32, i32) {
    %c0_i32 = arith.constant 0 : i32
    %c0_i32_0 = arith.constant 0 : i32
    %c0_i32_1 = arith.constant 0 : i32
    return %c0_i32, %c0_i32_0 : i32, i32
  }
  func.func @transform_6(%arg0: i32) -> (i32, i32) {
    %c0_i32 = arith.constant 0 : i32
    %c0_i32_0 = arith.constant 0 : i32
    %c0_i32_1 = arith.constant 0 : i32
    return %c0_i32, %c0_i32_0 : i32, i32
  }
  func.func @transform_7(%arg0: i32) -> (i32, i32) {
    %c0_i32 = arith.constant 0 : i32
    %c0_i32_0 = arith.constant 0 : i32
    %c0_i32_1 = arith.constant 0 : i32
    return %c0_i32, %c0_i32_0 : i32, i32
  }
  func.func @transform_8(%arg0: i32) -> (i32, i32) {
    %c0_i32 = arith.constant 0 : i32
    %c0_i32_0 = arith.constant 0 : i32
    %c0_i32_1 = arith.constant 0 : i32
    return %c0_i32, %c0_i32_0 : i32, i32
  }
  func.func @transform_9(%arg0: i32) -> (i32, i32) {
    %c0_i32 = arith.constant 0 : i32
    %c0_i32_0 = arith.constant 0 : i32
    %c0_i32_1 = arith.constant 0 : i32
    return %c0_i32, %c0_i32_0 : i32, i32
  }
}

</mosaic_0001>

<bundles_post_ra>
// kernel: gcn_forward.1
= control target key start
LH: loop header
LB: loop body
LE: loop exit
PB: predicated region body
PF: predicated region fallthrough
CT: control target
= control target key end

     0   :  { %vm1249_vm0 = vmmov 0   ;;  %s1485_s3 = inlined_call_operand.vmem [shape: bf16[128,128], index: 3, kind: input, shape index: {}]   ;;  %s1486_s1 = inlined_call_operand.vmem [shape: bf16[128,128], index: 1, kind: input, shape index: {}]   ;;  %s1487_s0 = inlined_call_operand.vmem [shape: bf16[128,128], index: 0, kind: input, shape index: {}]   ;;  %s1488_s5 = inlined_call_operand.vmem [shape: bf16[128,128], index: 5, kind: input, shape index: {}]   ;;  %s1489_s4 = inlined_call_operand.vmem [shape: f32[1,128], index: 4, kind: input, shape index: {}]   ;;  %s1490_s7 = inlined_call_operand.vmem [shape: bf16[128,128], index: 7, kind: input, shape index: {}]   ;;  %s1491_s6 = inlined_call_operand.vmem [shape: f32[1,128], index: 6, kind: input, shape index: {}]   ;;  %s1492_s2 = inlined_call_operand.vmem [shape: bf16[8,128], index: 2, kind: input, shape index: {}]   ;;  %s1493_s8 = inlined_call_operand.vmem [shape: f32[1,128], index: 8, kind: input, shape index: {}]   ;;  %s1494_s9 = inlined_call_operand.vmem [shape: f32[8,128], index: 9, kind: output, shape index: {}]  }
   0x1   :  { %v1208_v0 = vld [vmem:[%s1485_s3 + $0x38] sm:$0xff]   ;;  %v1209_v1 = vld [vmem:[%s1485_s3 + $0x30] sm:$0xff]   ;;  %v1210_v2 = vld [vmem:[%s1485_s3 + $0x28] sm:$0xff]  }
   0x2   :  { %1038 = vmatprep.subr.bf16.mxu0 %v1208_v0  ;;  %v1211_v3 = vld [vmem:[%s1485_s3 + $0x20] sm:$0xff]   ;;  %v1212_v5 = vld [vmem:[%s1485_s3 + $0x18] sm:$0xff]   ;;  %v1213_v6 = vld [vmem:[%s1485_s3 + $0x10] sm:$0xff]  }
   0x3   :  { %1039 = vmatpush3.bf16.msra.mxu0 %v1208_v0  ;;  %v1216_v4 = vld [vmem:[%s1486_s1] sm:$0xff]   ;;  %v1214_v7 = vld [vmem:[%s1485_s3 + $0x8] sm:$0xff]   ;;  %v1218_v10 = vld [vmem:[%s1486_s1 + $0x10] sm:$0xff]  }
   0x4   :  { %1040 = vmatprep.subr.bf16.mxu0 %v1209_v1  ;;  %1054 = vmatprep.mubr.bf16.mxu0 %v1216_v4  ;;  %v1215_v8 = vld [vmem:[%s1485_s3] sm:$0xff]   ;;  %v1217_v9 = vld [vmem:[%s1486_s1 + $0x8] sm:$0xff]   ;;  %v1219_v11 = vld [vmem:[%s1486_s1 + $0x18] sm:$0xff]  }
   0x5   :  { %v1220_v12 = vld [vmem:[%s1486_s1 + $0x20] sm:$0xff]   ;;  %v1221_v13 = vld [vmem:[%s1486_s1 + $0x28] sm:$0xff]   ;;  %v1222_v14 = vld [vmem:[%s1486_s1 + $0x30] sm:$0xff]  }
   0x6   :  { %v1223_v15 = vld [vmem:[%s1486_s1 + $0x38] sm:$0xff]   ;;  %v1351_v16 = vld [vmem:[%s1487_s0] sm:$0xff]   ;;  %v1233_v18 = vld [vmem:[%s1488_s5 + $0x30] sm:$0xff]  }
   0x7   :  { %1041 = vmatpush3.bf16.msra.mxu0 %v1209_v1  ;;  %1086 = vmatprep.mubr.bf16.mxu1 %v1351_v16  ;;  %v1232_v17 = vld [vmem:[%s1488_s5 + $0x38] sm:$0xff]   ;;  %v1234_v19 = vld [vmem:[%s1488_s5 + $0x28] sm:$0xff]   ;;  %v1235_v20 = vld [vmem:[%s1488_s5 + $0x20] sm:$0xff]  }
   0x8   :  { %1042 = vmatprep.subr.bf16.mxu0 %v1210_v2  ;;  %v1236_v21 = vld [vmem:[%s1488_s5 + $0x18] sm:$0xff]   ;;  %v1372_v46 = vld [vmem:[%s1487_s0 + $0x8] sm:$0xff]   ;;  %v1377_v47 = vld [vmem:[%s1487_s0 + $0x10] sm:$0xff]  }
   0x9   :  { %v1384_v48 = vld [vmem:[%s1487_s0 + $0x18] sm:$0xff]   ;;  %v1389_v49 = vld [vmem:[%s1487_s0 + $0x20] sm:$0xff]   ;;  %v1396_v50 = vld [vmem:[%s1487_s0 + $0x28] sm:$0xff]  }
   0xa   :  { %v1401_v51 = vld [vmem:[%s1487_s0 + $0x30] sm:$0xff]   ;;  %v1408_v52 = vld [vmem:[%s1487_s0 + $0x38] sm:$0xff]   ;;  %v1238_v54 = vld [vmem:[%s1488_s5 + $0x8] sm:$0xff]  }
   0xb   :  { %1043 = vmatpush3.bf16.msra.mxu0 %v1210_v2  ;;  %v1237_v53 = vld [vmem:[%s1488_s5 + $0x10] sm:$0xff]   ;;  %v1239_v55 = vld [vmem:[%s1488_s5] sm:$0xff]  }
   0xc   :  { %1044 = vmatprep.subr.bf16.mxu0 %v1211_v3  ;;  %v929_v58 = vld [vmem:[%s1489_s4] ss:$0 sm:$0xff] }
   0xf   :  { %1045 = vmatpush3.bf16.msra.mxu0 %v1211_v3 }
  0x10   :  { %1046 = vmatprep.subr.bf16.mxu0 %v1212_v5 }
  0x13   :  { %1047 = vmatpush3.bf16.msra.mxu0 %v1212_v5 }
  0x14   :  { %1048 = vmatprep.subr.bf16.mxu0 %v1213_v6 }
  0x17   :  { %1049 = vmatpush3.bf16.msra.mxu0 %v1213_v6 }
  0x18   :  { %1050 = vmatprep.subr.bf16.mxu0 %v1214_v7 }
  0x1b   :  { %1051 = vmatpush3.bf16.msra.mxu0 %v1214_v7 }
  0x1c   :  { %1052 = vmatprep.subr.bf16.mxu0 %v1215_v8 }
  0x1f   :  { %1053 = vmatpush3.bf16.msra.mxu0 %v1215_v8 }
  0x20   :  { %1102 = vmatprep.subr.bf16.mxu0 %v1232_v17 }
  0x22   :  { %1055 = vmatmul.mubr.bf16.vlgmr.msra.gmra.mxu0 %v1217_v9 }
  0x23   :  { %1058 = vmatprep.mubr.bf16.mxu0 %v1218_v10  ;;  %1103 = vmatpush3.bf16.msra.mxu0 %v1232_v17 }
  0x24   :  { %1104 = vmatprep.subr.bf16.mxu0 %v1233_v18 }
  0x27   :  { %1105 = vmatpush3.bf16.msra.mxu0 %v1233_v18 }
  0x28   :  { %1106 = vmatprep.subr.bf16.mxu0 %v1234_v19 }
  0x2a   :  { %1059 = vmatmul.mubr.bf16.gmra.mxu0 %v1219_v11 }
  0x2b   :  { %1062 = vmatprep.mubr.bf16.mxu0 %v1220_v12  ;;  %1107 = vmatpush3.bf16.msra.mxu0 %v1234_v19 }
  0x2c   :  { %1108 = vmatprep.subr.bf16.mxu0 %v1235_v20 }
  0x2f   :  { %1109 = vmatpush3.bf16.msra.mxu0 %v1235_v20 }
  0x30   :  { %1110 = vmatprep.subr.bf16.mxu0 %v1236_v21 }
  0x32   :  { %1063 = vmatmul.mubr.bf16.gmra.mxu0 %v1221_v13 }
  0x33   :  { %1066 = vmatprep.mubr.bf16.mxu0 %v1222_v14  ;;  %1111 = vmatpush3.bf16.msra.mxu0 %v1236_v21 }
  0x34   :  { %1112 = vmatprep.subr.bf16.mxu0 %v1237_v53 }
  0x37   :  { %1113 = vmatpush3.bf16.msra.mxu0 %v1237_v53 }
  0x38   :  { %1114 = vmatprep.subr.bf16.mxu0 %v1238_v54 }
  0x3a   :  { %1067 = vmatmul.mubr.bf16.gmra.mxu0 %v1223_v15 }
  0x3b   :  { %1115 = vmatpush3.bf16.msra.mxu0 %v1238_v54 }
  0x3c   :  { %1116 = vmatprep.subr.bf16.mxu0 %v1239_v55 }
  0x3f   :  { %1117 = vmatpush3.bf16.msra.mxu0 %v1239_v55 }
  0xe2   :  { %v1056_v22 = vpop.f32.mrf.mxu0 }
  0xe4   :  { %v211_v23 = vpop.f32.mrf.mxu0 }
  0xe6   :  { %v1057_v24 = vpop.f32.mrf.mxu0 }
  0xe7   :  { %v275_v44 = vpack.c.bf16 %v1057_v24, %v1056_v22 }
  0xe8   :  { %v214_v25 = vpop.f32.mrf.mxu0 }
  0xe9   :  { %v274_v45 = vpack.c.bf16 %v214_v25, %v211_v23 }
  0xea   :  { %v1060_v26 = vpop.f32.mrf.mxu0 }
  0xec   :  { %v227_v27 = vpop.f32.mrf.mxu0 }
  0xee   :  { %v1061_v28 = vpop.f32.mrf.mxu0 }
  0xef   :  { %v277_v42 = vpack.c.bf16 %v1061_v28, %v1060_v26 }
  0xf0   :  { %v230_v29 = vpop.f32.mrf.mxu0 }
  0xf1   :  { %v276_v43 = vpack.c.bf16 %v230_v29, %v227_v27 }
  0xf2   :  { %v1064_v30 = vpop.f32.mrf.mxu0 }
  0xf4   :  { %v243_v31 = vpop.f32.mrf.mxu0 }
  0xf6   :  { %v1065_v32 = vpop.f32.mrf.mxu0 }
  0xf7   :  { %v279_v40 = vpack.c.bf16 %v1065_v32, %v1064_v30 }
  0xf8   :  { %v246_v33 = vpop.f32.mrf.mxu0 }
  0xf9   :  { %v278_v41 = vpack.c.bf16 %v246_v33, %v243_v31 }
  0xfa   :  { %v1068_v34 = vpop.f32.mrf.mxu0 }
  0xfc   :  { %v259_v35 = vpop.f32.mrf.mxu0 }
  0xfe   :  { %v1069_v36 = vpop.f32.mrf.mxu0 }
  0xff   :  { %v281_v37 = vpack.c.bf16 %v1069_v36, %v1068_v34 }
 0x100   :  { %v262_v38 = vpop.f32.mrf.mxu0 }
 0x101   :  { %v280_v39 = vpack.c.bf16 %v262_v38, %v259_v35  ;;  %1070 = vmatprep.subr.bf16.mxu1 %v281_v37 }
 0x102   :  { %1071 = vmatpush3.bf16.msra.mxu1 %v281_v37 }
 0x103   :  { %1072 = vmatprep.subr.bf16.mxu1 %v280_v39 }
 0x106   :  { %1073 = vmatpush3.bf16.msra.mxu1 %v280_v39 }
 0x107   :  { %1074 = vmatprep.subr.bf16.mxu1 %v279_v40 }
 0x10a   :  { %1075 = vmatpush3.bf16.msra.mxu1 %v279_v40 }
 0x10b   :  { %1076 = vmatprep.subr.bf16.mxu1 %v278_v41 }
 0x10e   :  { %1077 = vmatpush3.bf16.msra.mxu1 %v278_v41 }
 0x10f   :  { %1078 = vmatprep.subr.bf16.mxu1 %v277_v42 }
 0x112   :  { %1079 = vmatpush3.bf16.msra.mxu1 %v277_v42 }
 0x113   :  { %1080 = vmatprep.subr.bf16.mxu1 %v276_v43 }
 0x116   :  { %1081 = vmatpush3.bf16.msra.mxu1 %v276_v43 }
 0x117   :  { %1082 = vmatprep.subr.bf16.mxu1 %v275_v44 }
 0x11a   :  { %1083 = vmatpush3.bf16.msra.mxu1 %v275_v44 }
 0x11b   :  { %1084 = vmatprep.subr.bf16.mxu1 %v274_v45 }
 0x11e   :  { %1085 = vmatpush3.bf16.msra.mxu1 %v274_v45 }
 0x121   :  { %1087 = vmatmul.mubr.bf16.vlgmr.msra.gmra.mxu1 %v1372_v46 }
 0x122   :  { %1090 = vmatprep.mubr.bf16.mxu1 %v1377_v47 }
 0x129   :  { %1091 = vmatmul.mubr.bf16.gmra.mxu1 %v1384_v48 }
 0x12a   :  { %1094 = vmatprep.mubr.bf16.mxu1 %v1389_v49 }
 0x131   :  { %1095 = vmatmul.mubr.bf16.gmra.mxu1 %v1396_v50 }
 0x132   :  { %1098 = vmatprep.mubr.bf16.mxu1 %v1401_v51 }
 0x139   :  { %1099 = vmatmul.mubr.bf16.gmra.mxu1 %v1408_v52 }
 0x13a   :  { %1150 = vmatprep.mubr.bf16.mxu1 %v1351_v16 }
 0x1e1   :  { %v1088_v56 = vpop.f32.mrf.mxu1 }
 0x1e2   :  { %v380_v62 = vadd.f32 %v1088_v56, %v929_v58 }
 0x1e3   :  { %v371_v57 = vpop.f32.mrf.mxu1 }
 0x1e4   :  { %v372_v60 = vadd.f32 %v929_v58, %v371_v57  ;;  %v436_v5 = vmax.f32 %v380_v62, 0.0 }
 0x1e5   :  { %v1089_v59 = vpop.f32.mrf.mxu1 }
 0x1e6   :  { %v383_v61 = vadd.f32 %v1089_v59, %v929_v58  ;;  %v434_v3 = vmax.f32 %v372_v60, 0.0 }
 0x1e7   :  { %v374_v63 = vpop.f32.mrf.mxu1 }
 0x1e8   :  { %v375_v0 = vadd.f32 %v929_v58, %v374_v63  ;;  %v437_v1 = vmax.f32 %v383_v61, 0.0 }
 0x1e9   :  { %v1092_v2 = vpop.f32.mrf.mxu1 }
 0x1ea   :  { %v435_v4 = vmax.f32 %v375_v0, 0.0  ;;  %v451_v8 = vpack.c.bf16 %v437_v1, %v436_v5  ;;  %v396_v12 = vadd.f32 %v1092_v2, %v929_v58 }
 0x1eb   :  { %v387_v6 = vpop.f32.mrf.mxu1 }
 0x1ec   :  { %v450_v7 = vpack.c.bf16 %v435_v4, %v434_v3  ;;  %v388_v10 = vadd.f32 %v929_v58, %v387_v6  ;;  %v440_v19 = vmax.f32 %v396_v12, 0.0 }
 0x1ed   :  { %v1093_v9 = vpop.f32.mrf.mxu1 }
 0x1ee   :  { %v399_v11 = vadd.f32 %v1093_v9, %v929_v58  ;;  %1118 = vmatprep.mubr.bf16.mxu0 %v450_v7  ;;  %v438_v17 = vmax.f32 %v388_v10, 0.0 }
 0x1ef   :  { %v390_v13 = vpop.f32.mrf.mxu1  ;;  %1119 = vmatmul.mubr.bf16.vlgmr.msra.gmra.mxu0 %v451_v8 }
 0x1f0   :  { %v391_v14 = vadd.f32 %v929_v58, %v390_v13  ;;  %v441_v15 = vmax.f32 %v399_v11, 0.0 }
 0x1f1   :  { %v1096_v16 = vpop.f32.mrf.mxu1 }
 0x1f2   :  { %v439_v18 = vmax.f32 %v391_v14, 0.0  ;;  %v453_v22 = vpack.c.bf16 %v441_v15, %v440_v19  ;;  %v412_v26 = vadd.f32 %v1096_v16, %v929_v58  ;;  %v1248_v16 = vmov 0.0  }
 0x1f3   :  { %v403_v20 = vpop.f32.mrf.mxu1  ;;  %1166 = vmatprep.subr.bf16.mxu0 %v1248_v16 }
 0x1f4   :  { %v452_v21 = vpack.c.bf16 %v439_v18, %v438_v17  ;;  %v404_v24 = vadd.f32 %v929_v58, %v403_v20  ;;  %v444_v33 = vmax.f32 %v412_v26, 0.0 }
 0x1f5   :  { %v1097_v23 = vpop.f32.mrf.mxu1 }
 0x1f6   :  { %v415_v25 = vadd.f32 %v1097_v23, %v929_v58  ;;  %1122 = vmatprep.mubr.bf16.mxu0 %v452_v21  ;;  %v442_v31 = vmax.f32 %v404_v24, 0.0 }
 0x1f7   :  { %v406_v27 = vpop.f32.mrf.mxu1  ;;  %1123 = vmatmul.mubr.bf16.gmra.mxu0 %v453_v22 }
 0x1f8   :  { %v407_v28 = vadd.f32 %v929_v58, %v406_v27  ;;  %v445_v29 = vmax.f32 %v415_v25, 0.0 }
 0x1f9   :  { %v1100_v30 = vpop.f32.mrf.mxu1 }
 0x1fa   :  { %v443_v32 = vmax.f32 %v407_v28, 0.0  ;;  %v455_v36 = vpack.c.bf16 %v445_v29, %v444_v33  ;;  %v428_v40 = vadd.f32 %v1100_v30, %v929_v58  ;;  %v946_v30 = vld [vmem:[%s1491_s6] ss:$0 sm:$0xff] }
 0x1fb   :  { %v419_v34 = vpop.f32.mrf.mxu1 }
 0x1fc   :  { %v454_v35 = vpack.c.bf16 %v443_v32, %v442_v31  ;;  %v420_v38 = vadd.f32 %v929_v58, %v419_v34  ;;  %v448_v53 = vmax.f32 %v428_v40, 0.0 }
 0x1fd   :  { %v1101_v37 = vpop.f32.mrf.mxu1 }
 0x1fe   :  { %v431_v39 = vadd.f32 %v1101_v37, %v929_v58  ;;  %1126 = vmatprep.mubr.bf16.mxu0 %v454_v35  ;;  %v446_v44 = vmax.f32 %v420_v38, 0.0 }
 0x1ff   :  { %v422_v41 = vpop.f32.mrf.mxu1  ;;  %1127 = vmatmul.mubr.bf16.gmra.mxu0 %v455_v36 }
 0x200   :  { %v423_v42 = vadd.f32 %v929_v58, %v422_v41  ;;  %v449_v43 = vmax.f32 %v431_v39, 0.0 }
 0x202   :  { %v447_v45 = vmax.f32 %v423_v42, 0.0  ;;  %v457_v55 = vpack.c.bf16 %v449_v43, %v448_v53 }
 0x204   :  { %v456_v54 = vpack.c.bf16 %v447_v45, %v446_v44 }
 0x206   :  { %1130 = vmatprep.mubr.bf16.mxu0 %v456_v54 }
 0x207   :  { %1131 = vmatmul.mubr.bf16.gmra.mxu0 %v457_v55 }
 0x208   :  { %1182 = vmatprep.mubr.msk.bf16.mxu0 %vm1249_vm0, %v1248_v16 }
 0x2af   :  { %v1120_v56 = vpop.f32.mrf.mxu0 }
 0x2b1   :  { %v556_v57 = vpop.f32.mrf.mxu0 }
 0x2b3   :  { %v1121_v59 = vpop.f32.mrf.mxu0 }
 0x2b4   :  { %v620_v14 = vpack.c.bf16 %v1121_v59, %v1120_v56 }
 0x2b5   :  { %v559_v60 = vpop.f32.mrf.mxu0 }
 0x2b6   :  { %v619_v15 = vpack.c.bf16 %v559_v60, %v556_v57 }
 0x2b7   :  { %v1124_v61 = vpop.f32.mrf.mxu0 }
 0x2b9   :  { %v572_v62 = vpop.f32.mrf.mxu0 }
 0x2bb   :  { %v1125_v63 = vpop.f32.mrf.mxu0 }
 0x2bc   :  { %v622_v12 = vpack.c.bf16 %v1125_v63, %v1124_v61 }
 0x2bd   :  { %v575_v0 = vpop.f32.mrf.mxu0 }
 0x2be   :  { %v621_v13 = vpack.c.bf16 %v575_v0, %v572_v62 }
 0x2bf   :  { %v1128_v1 = vpop.f32.mrf.mxu0 }
 0x2c1   :  { %v588_v2 = vpop.f32.mrf.mxu0 }
 0x2c3   :  { %v1129_v3 = vpop.f32.mrf.mxu0 }
 0x2c4   :  { %v624_v10 = vpack.c.bf16 %v1129_v3, %v1128_v1 }
 0x2c5   :  { %v591_v58 = vpop.f32.mrf.mxu0 }
 0x2c6   :  { %v623_v11 = vpack.c.bf16 %v591_v58, %v588_v2 }
 0x2c7   :  { %v1132_v4 = vpop.f32.mrf.mxu0 }
 0x2c9   :  { %v604_v5 = vpop.f32.mrf.mxu0 }
 0x2cb   :  { %v1133_v6 = vpop.f32.mrf.mxu0 }
 0x2cc   :  { %v626_v7 = vpack.c.bf16 %v1133_v6, %v1132_v4 }
 0x2cd   :  { %v607_v8 = vpop.f32.mrf.mxu0 }
 0x2ce   :  { %v625_v9 = vpack.c.bf16 %v607_v8, %v604_v5  ;;  %1134 = vmatprep.subr.bf16.mxu1 %v626_v7 }
 0x2cf   :  { %1135 = vmatpush3.bf16.msra.mxu1 %v626_v7 }
 0x2d0   :  { %1136 = vmatprep.subr.bf16.mxu1 %v625_v9 }
 0x2d3   :  { %1137 = vmatpush3.bf16.msra.mxu1 %v625_v9 }
 0x2d4   :  { %1138 = vmatprep.subr.bf16.mxu1 %v624_v10 }
 0x2d7   :  { %1139 = vmatpush3.bf16.msra.mxu1 %v624_v10 }
 0x2d8   :  { %1140 = vmatprep.subr.bf16.mxu1 %v623_v11 }
 0x2db   :  { %1141 = vmatpush3.bf16.msra.mxu1 %v623_v11 }
 0x2dc   :  { %1142 = vmatprep.subr.bf16.mxu1 %v622_v12 }
 0x2df   :  { %1143 = vmatpush3.bf16.msra.mxu1 %v622_v12 }
 0x2e0   :  { %1144 = vmatprep.subr.bf16.mxu1 %v621_v13 }
 0x2e3   :  { %1145 = vmatpush3.bf16.msra.mxu1 %v621_v13 }
 0x2e4   :  { %1146 = vmatprep.subr.bf16.mxu1 %v620_v14 }
 0x2e7   :  { %1147 = vmatpush3.bf16.msra.mxu1 %v620_v14 }
 0x2e8   :  { %1148 = vmatprep.subr.bf16.mxu1 %v619_v15 }
 0x2eb   :  { %1149 = vmatpush3.bf16.msra.mxu1 %v619_v15 }
 0x2ec   :  { %1186 = vmatprep.subr.bf16.mxu1 %v1248_v16 }
 0x2ee   :  { %1151 = vmatmul.mubr.bf16.vlgmr.msra.gmra.mxu1 %v1372_v46  ;;  %v1240_v46 = vld [vmem:[%s1490_s7 + $0x38] sm:$0xff]  }
 0x2ef   :  { %1154 = vmatprep.mubr.bf16.mxu1 %v1377_v47  ;;  %1187 = vmatpush3.bf16.msra.mxu1 %v1240_v46  ;;  %v1241_v47 = vld [vmem:[%s1490_s7 + $0x30] sm:$0xff]  }
 0x2f0   :  { %1188 = vmatprep.subr.bf16.mxu1 %v1248_v16 }
 0x2f3   :  { %1189 = vmatpush3.bf16.msra.mxu1 %v1241_v47  ;;  %v755_v47 = vld [vmem:[%s1492_s2] sm:$0xf] }
 0x2f4   :  { %1190 = vmatprep.subr.bf16.mxu1 %v1248_v16 }
 0x2f6   :  { %1155 = vmatmul.mubr.bf16.gmra.mxu1 %v1384_v48  ;;  %v1242_v48 = vld [vmem:[%s1490_s7 + $0x28] sm:$0xff]  }
 0x2f7   :  { %1158 = vmatprep.mubr.bf16.mxu1 %v1389_v49  ;;  %1191 = vmatpush3.bf16.msra.mxu1 %v1242_v48  ;;  %v1243_v49 = vld [vmem:[%s1490_s7 + $0x20] sm:$0xff]  }
 0x2f8   :  { %1192 = vmatprep.subr.bf16.mxu1 %v1248_v16  ;;  %v1247_v48 = vld [vmem:[%s1490_s7] sm:$0xff]  }
 0x2fb   :  { %1193 = vmatpush3.bf16.msra.mxu1 %v1243_v49 }
 0x2fc   :  { %1194 = vmatprep.subr.bf16.mxu1 %v1248_v16 }
 0x2fe   :  { %1159 = vmatmul.mubr.bf16.gmra.mxu1 %v1396_v50  ;;  %v1244_v50 = vld [vmem:[%s1490_s7 + $0x18] sm:$0xff]  }
 0x2ff   :  { %1162 = vmatprep.mubr.bf16.mxu1 %v1401_v51  ;;  %1195 = vmatpush3.bf16.msra.mxu1 %v1244_v50  ;;  %v1245_v51 = vld [vmem:[%s1490_s7 + $0x10] sm:$0xff]  }
 0x300   :  { %1196 = vmatprep.subr.bf16.mxu1 %v1248_v16 }
 0x303   :  { %1197 = vmatpush3.bf16.msra.mxu1 %v1245_v51 }
 0x304   :  { %1198 = vmatprep.subr.bf16.mxu1 %v1248_v16 }
 0x306   :  { %1163 = vmatmul.mubr.bf16.gmra.mxu1 %v1408_v52  ;;  %v1246_v52 = vld [vmem:[%s1490_s7 + $0x8] sm:$0xff]  }
 0x307   :  { %1202 = vmatprep.mubr.msk.bf16.mxu1 %vm1249_vm0, %v1248_v16  ;;  %1199 = vmatpush3.bf16.msra.mxu1 %v1246_v52 }
 0x308   :  { %1200 = vmatprep.subr.bf16.mxu1 %v1248_v16 }
 0x30b   :  { %1201 = vmatpush3.bf16.msra.mxu1 %v1247_v48 }
 0x3ae   :  { %v1152_v17 = vpop.f32.mrf.mxu1 }
 0x3af   :  { %v677_v6 = vadd.f32 %v1152_v17, %v946_v30 }
 0x3b0   :  { %v668_v18 = vpop.f32.mrf.mxu1 }
 0x3b1   :  { %v733_v11 = vmax.f32 %v677_v6, 0.0  ;;  %v669_v12 = vadd.f32 %v946_v30, %v668_v18 }
 0x3b2   :  { %v1153_v19 = vpop.f32.mrf.mxu1 }
 0x3b3   :  { %v680_v58 = vadd.f32 %v1153_v19, %v946_v30  ;;  %v731_v15 = vmax.f32 %v669_v12, 0.0 }
 0x3b4   :  { %v671_v20 = vpop.f32.mrf.mxu1 }
 0x3b5   :  { %v734_v8 = vmax.f32 %v680_v58, 0.0  ;;  %v672_v9 = vadd.f32 %v946_v30, %v671_v20 }
 0x3b6   :  { %v1156_v21 = vpop.f32.mrf.mxu1 }
 0x3b7   :  { %v693_v61 = vadd.f32 %v1156_v21, %v946_v30  ;;  %v748_v13 = vpack.c.bf16 %v734_v8, %v733_v11  ;;  %v732_v14 = vmax.f32 %v672_v9, 0.0 }
 0x3b8   :  { %v684_v22 = vpop.f32.mrf.mxu1 }
 0x3b9   :  { %v737_v2 = vmax.f32 %v693_v61, 0.0  ;;  %v685_v3 = vadd.f32 %v946_v30, %v684_v22  ;;  %v747_v46 = vpack.c.bf16 %v732_v14, %v731_v15 }
 0x3ba   :  { %v1157_v23 = vpop.f32.mrf.mxu1 }
 0x3bb   :  { %v696_v57 = vadd.f32 %v1157_v23, %v946_v30  ;;  %v735_v7 = vmax.f32 %v685_v3, 0.0 }
 0x3bc   :  { %v687_v24 = vpop.f32.mrf.mxu1 }
 0x3bd   :  { %v738_v63 = vmax.f32 %v696_v57, 0.0  ;;  %v688_v0 = vadd.f32 %v946_v30, %v687_v24 }
 0x3be   :  { %v1160_v25 = vpop.f32.mrf.mxu1 }
 0x3bf   :  { %v709_v43 = vadd.f32 %v1160_v25, %v946_v30  ;;  %v750_v4 = vpack.c.bf16 %v738_v63, %v737_v2  ;;  %v736_v5 = vmax.f32 %v688_v0, 0.0 }
 0x3c0   :  { %v700_v26 = vpop.f32.mrf.mxu1 }
 0x3c1   :  { %v741_v55 = vmax.f32 %v709_v43, 0.0  ;;  %v701_v56 = vadd.f32 %v946_v30, %v700_v26  ;;  %v749_v10 = vpack.c.bf16 %v736_v5, %v735_v7 }
 0x3c2   :  { %v1161_v27 = vpop.f32.mrf.mxu1 }
 0x3c3   :  { %v712_v40 = vadd.f32 %v1161_v27, %v946_v30  ;;  %v739_v62 = vmax.f32 %v701_v56, 0.0 }
 0x3c4   :  { %v703_v28 = vpop.f32.mrf.mxu1 }
 0x3c5   :  { %v742_v45 = vmax.f32 %v712_v40, 0.0  ;;  %v704_v53 = vadd.f32 %v946_v30, %v703_v28 }
 0x3c6   :  { %v1164_v29 = vpop.f32.mrf.mxu1 }
 0x3c7   :  { %v725_v32 = vadd.f32 %v1164_v29, %v946_v30  ;;  %v752_v59 = vpack.c.bf16 %v742_v45, %v741_v55  ;;  %v740_v60 = vmax.f32 %v704_v53, 0.0 }
 0x3c8   :  { %v716_v31 = vpop.f32.mrf.mxu1 }
 0x3c9   :  { %v745_v36 = vmax.f32 %v725_v32, 0.0  ;;  %v717_v37 = vadd.f32 %v946_v30, %v716_v31  ;;  %v751_v1 = vpack.c.bf16 %v740_v60, %v739_v62 }
 0x3ca   :  { %v1165_v33 = vpop.f32.mrf.mxu1 }
 0x3cb   :  { %v728_v34 = vadd.f32 %v1165_v33, %v946_v30  ;;  %v743_v44 = vmax.f32 %v717_v37, 0.0 }
 0x3cc   :  { %v719_v35 = vpop.f32.mrf.mxu1 }
 0x3cd   :  { %v746_v38 = vmax.f32 %v728_v34, 0.0  ;;  %v720_v39 = vadd.f32 %v946_v30, %v719_v35 }
 0x3cf   :  { %v754_v41 = vpack.c.bf16 %v746_v38, %v745_v36  ;;  %v744_v42 = vmax.f32 %v720_v39, 0.0 }
 0x3d1   :  { %1167 = vmatpush3.bf16.msra.mxu0 %v754_v41  ;;  %v753_v54 = vpack.c.bf16 %v744_v42, %v743_v44 }
 0x3d2   :  { %1168 = vmatprep.subr.bf16.mxu0 %v1248_v16 }
 0x3d5   :  { %1169 = vmatpush3.bf16.msra.mxu0 %v753_v54 }
 0x3d6   :  { %1170 = vmatprep.subr.bf16.mxu0 %v1248_v16 }
 0x3d9   :  { %1171 = vmatpush3.bf16.msra.mxu0 %v752_v59 }
 0x3da   :  { %1172 = vmatprep.subr.bf16.mxu0 %v1248_v16 }
 0x3dd   :  { %1173 = vmatpush3.bf16.msra.mxu0 %v751_v1 }
 0x3de   :  { %1174 = vmatprep.subr.bf16.mxu0 %v1248_v16 }
 0x3e1   :  { %1175 = vmatpush3.bf16.msra.mxu0 %v750_v4 }
 0x3e2   :  { %1176 = vmatprep.subr.bf16.mxu0 %v1248_v16 }
 0x3e5   :  { %1177 = vmatpush3.bf16.msra.mxu0 %v749_v10 }
 0x3e6   :  { %1178 = vmatprep.subr.bf16.mxu0 %v1248_v16 }
 0x3e9   :  { %1179 = vmatpush3.bf16.msra.mxu0 %v748_v13 }
 0x3ea   :  { %1180 = vmatprep.subr.bf16.mxu0 %v1248_v16  ;;  %v947_v16 = vld [vmem:[%s1493_s8] ss:$0 sm:$0xff] }
 0x3ed   :  { %1181 = vmatpush3.bf16.msra.mxu0 %v747_v46 }
 0x3f0   :  { %1183 = vmatmul.mubr.bf16.vlgmr.msra.gmra.mxu0 %v755_v47 }
 0x4b0   :  { %v790_v49 = vpop.f32.mrf.mxu0 }
 0x4b1   :  { %v796_v50 = vpack.c.bf16 %v790_v49, %v790_v49 }
 0x4b2   :  { %v1184_v51 = vpop.f32.mrf.mxu0 }
 0x4b3   :  { %1203 = vmatmul.mubr.bf16.vlgmr.msra.gmra.mxu1 %v796_v50 }
 0x4b4   :  { %v793_v52 = vpop.f32.mrf.mxu0 }
 0x4b6   :  { %v1185_v17 = vpop.f32.mrf.mxu0 }
 0x573   :  { %v902_v18 = vpop.f32.mrf.mxu1 }
 0x574   :  { %v903_v19 = vadd.f32 %v947_v16, %v902_v18 }
 0x575   :  { %v1204_v20 = vpop.f32.mrf.mxu1 }
 0x576   :  { %908 = vst [vmem:[%s1494_s9] sm:$0xff] %v903_v19 }
 0x577   :  { %v905_v21 = vpop.f32.mrf.mxu1 }
 0x579   :  { %v1205_v22 = vpop.f32.mrf.mxu1 }

</bundles_post_ra>
